<compile_context>
chip_gen: v7x
topology: tpu7x:2x2x1
jax: 0.10.0
libtpu: 0.0.40
codegen_flags: <defaults>
</compile_context>

<pallas_src>
import functools
import math

import jax
import jax.numpy as jnp
from jax import lax, random
from jax.experimental import pallas as pl
from jax.experimental.pallas import tpu as pltpu

SQRT2 = math.sqrt(2.0)


def _leaky_relu_sqrt2(x):
    # fused_leaky_relu: leaky_relu(x, 0.2) * sqrt(2)
    return jnp.where(x >= 0.0, x, 0.2 * x) * SQRT2


def _wmat_layout(n_layers, dim):
    """Row offsets inside the packed weight slab (all blocks are `dim` lanes wide)."""
    off = 0
    lay = {}
    lay["map_w"] = off;   off += n_layers * dim     # mapping weights (transposed, in x out)
    lay["aff1_w"] = off;  off += dim                # aff1 weight transposed (D, C)
    lay["conv_w"] = off;  off += dim                # conv weight (C_out, C_in)
    lay["conv_sq"] = off; off += dim                # conv weight squared (C_out, C_in)
    lay["aff2_w"] = off;  off += dim                # aff2 weight (C, D)
    lay["map_b"] = off;   off += n_layers           # mapping biases (row vectors)
    lay["mean"] = off;    off += 1                  # (1 - t) * mean latent (row vector)
    lay["aff1_b"] = off;  off += 1                  # aff1 bias (row vector)
    rows = ((off + 7) // 8) * 8
    return lay, rows


# --------------------------------------------------------------------------
# Fused forward kernel: mapping + truncation + modulated conv decoder + toRGB
# (+ folded post_process) for the whole batch, one grid step, one dispatch.
# --------------------------------------------------------------------------
def fused_forward_kernel(z_ref, const_ref, wmat_ref, cvec_ref, rgbp_ref, out_ref, *,
                         n_layers, batch, dim, out_rows, trunc):
    L, D, C, B = n_layers, dim, dim, batch
    lay, wrows = _wmat_layout(L, D)

    # ---- mapping network (row layout: batch on sublanes, features on lanes) ----
    x = z_ref[...]                                                        # (B, D)
    x = x * lax.rsqrt(jnp.mean(x * x, axis=-1, keepdims=True) + 1e-8)     # PixelNorm
    tail = wmat_ref[lay["map_b"]:wrows, :]                                # bias rows (8, D)
    for l in range(L):                                                    # static unroll
        w_t = wmat_ref[lay["map_w"] + l * D: lay["map_w"] + (l + 1) * D, :]   # (D, D)
        b_row = tail[l:l + 1, :]                                          # (1, D)
        x = _leaky_relu_sqrt2(
            jnp.dot(x, w_t, preferred_element_type=jnp.float32) + b_row)

    # ---- truncation as a single FMA: w = t*w + (1-t)*mean (mean pre-scaled) ----
    x = trunc * x + tail[L:L + 1, :]                                      # (B, D)

    # ---- style affines ----
    # s1 row-oriented (folds along the conv in-dim / lanes)
    s1 = jnp.dot(x, wmat_ref[lay["aff1_w"]: lay["aff1_w"] + D, :],
                 preferred_element_type=jnp.float32) + tail[L + 1:L + 2, :]   # (B, C)
    # s2 / demod column-oriented (fold along out-dim / sublanes) via A @ B^T
    s2 = lax.dot_general(wmat_ref[lay["aff2_w"]: lay["aff2_w"] + C, :], x,
                         (((1,), (1,)), ((), ())),
                         preferred_element_type=jnp.float32) + cvec_ref[0:C, :]   # (C, B)
    demod = lax.rsqrt(
        lax.dot_general(wmat_ref[lay["conv_sq"]: lay["conv_sq"] + C, :], s1 * s1,
                        (((1,), (1,)), ((), ())),
                        preferred_element_type=jnp.float32) + 1e-8)       # (C, B)

    # ---- modulation + demodulation folded into the conv weight, stacked over B ----
    conv_w = wmat_ref[lay["conv_w"]: lay["conv_w"] + C, :]                # (C_out, C_in)
    w_stack = jnp.concatenate(
        [conv_w * s1[b:b + 1, :] * demod[:, b:b + 1] for b in range(B)],
        axis=0)                                                           # (B*C, C)
    conv_b = cvec_ref[C:2 * C, :]                                         # (C, 1)
    conv_b_stack = jnp.concatenate([conv_b] * B, axis=0)                  # (B*C, 1)

    # one MXU push for the whole batch: (B*C, C) @ (C, P)
    y = jnp.dot(w_stack, const_ref[...],
                preferred_element_type=jnp.float32) + conv_b_stack        # (B*C, P)
    y = _leaky_relu_sqrt2(y)
    # TODO(synk): StyleGAN2 per-pixel noise injection not implemented (perturb=0 path).

    # ---- toRGB (modulated by s2, no demod), merged over batch via a host-side
    #      block-diagonal kron(I_B, 0.5*rgb_w); post_process folded into weight/bias ----
    s2_stack = jnp.concatenate([s2[:, b:b + 1] for b in range(B)], axis=0)    # (B*C, 1)
    rgb_base = rgbp_ref[0:out_rows, :]                                    # (out_rows, B*C)
    rgb_bias = rgbp_ref[out_rows:2 * out_rows, 0:1]                       # (out_rows, 1)
    out_ref[...] = jnp.dot(rgb_base, y * s2_stack,
                           preferred_element_type=jnp.float32) + rgb_bias # lane-dense store


# --------------------------------------------------------------------------
# Camera params (plain-JAX glue; deterministic stand-in for generate_camera_params)
# --------------------------------------------------------------------------
def generate_camera_params_jax(resolution, batch, fov_ang=6.0, dist_radius=0.12):
    focal = 0.5 * resolution / math.tan(0.5 * math.radians(fov_ang))
    focals = jnp.full((batch, 1), focal, jnp.float32)
    near = jnp.full((batch, 1), 1.0 - dist_radius, jnp.float32)
    far = jnp.full((batch, 1), 1.0 + dist_radius, jnp.float32)
    R = jnp.tile(jnp.eye(3, dtype=jnp.float32)[None], (batch, 1, 1))
    t = jnp.tile(jnp.array([[0.0], [0.0], [1.0]], jnp.float32)[None], (batch, 1, 1))
    extrinsics = jnp.concatenate([R, t], axis=-1)                 # (B, 3, 4)
    locations = jnp.zeros((batch, 2), jnp.float32)                # (azim, elev)
    return extrinsics, focals, near, far, locations


# --------------------------------------------------------------------------
# Wrapper (parameter setup + pallas_call plumbing)
# --------------------------------------------------------------------------
class StyleSDFWrapperPallas:
    def __init__(self, source_model_type="ffhq", sample_truncation=0.7,
                 style_dim=32, n_mlp=3, out_res=16, feat_ch=32, seed=0):
        assert style_dim == feat_ch, "packed-slab layout assumes style_dim == feat_ch"
        self.source_model_type = source_model_type
        self.truncation_ratio = float(sample_truncation)
        self.style_dim = style_dim          # latent_dim in the PyTorch wrapper
        self.n_mlp = n_mlp
        self.out_res = out_res              # renderer_output_size (small synthetic)
        self.feat_ch = feat_ch
        self.fov = 6.0                      # opt.camera.fov
        self.dist_radius = 0.12

        lr_mlp = 0.01
        D, C, L = style_dim, feat_ch, n_mlp
        P = out_res * out_res
        keys = random.split(random.PRNGKey(seed), 8)

        # mapping network: L x EqualLinear(D, D, lr_mul=0.01, 'fused_lrelu')
        # effective W = randn(out,in)/lr_mul * scale, scale = lr_mul/sqrt(in);
        # stored transposed (in, out) for the row layout.
        map_scale = (1.0 / math.sqrt(D)) * lr_mlp
        map_w = random.normal(keys[0], (L, D, D), jnp.float32) / lr_mlp * map_scale
        self.map_w_t = jnp.transpose(map_w, (0, 2, 1))                    # (L, in, out)
        self.map_b_rows = jnp.zeros((L, D), jnp.float32)                  # bias*lr_mul = 0

        # learned constant input, channels-major (C, P): pixels on lanes
        self.const_input = random.normal(keys[1], (C, P), jnp.float32)

        aff_scale = 1.0 / math.sqrt(D)
        aff1_w = random.normal(keys[2], (C, D), jnp.float32) * aff_scale  # (out, in)
        self.aff1_w_t = jnp.transpose(aff1_w)                             # (D, C)
        self.aff1_b_row = jnp.ones((1, C), jnp.float32)

        conv_scale = 1.0 / math.sqrt(C)
        self.conv_w = random.normal(keys[3], (C, C), jnp.float32) * conv_scale
        self.conv_w_sq = self.conv_w * self.conv_w                        # hoisted demod term
        self.conv_b_col = jnp.zeros((C, 1), jnp.float32)

        self.aff2_w = random.normal(keys[4], (C, D), jnp.float32) * aff_scale
        self.aff2_b_col = jnp.ones((C, 1), jnp.float32)

        rgb_scale = 1.0 / math.sqrt(C)
        self.rgb_w = random.normal(keys[5], (3, C), jnp.float32) * rgb_scale
        self.rgb_b = jnp.zeros((3, 1), jnp.float32)
        # post_process Normalize(mean=-1, std=2) == (img + 1)/2 folded into toRGB
        self.rgb_w_pp = 0.5 * self.rgb_w                                  # (3, C)
        self.rgb_b_pp = 0.5 * self.rgb_b + 0.5                            # (3, 1)

        # register_mean(): mean latent over a small sample batch (plain JAX, one shot)
        z_mean = random.normal(keys[6], (8, D), jnp.float32)
        w_mean = self._mapping_ref(z_mean)                                # (8, D)
        mean_row = jnp.mean(w_mean, axis=0, keepdims=True)                # (1, D)
        # fold truncation into a single FMA: w = t*w + (1-t)*mean
        self.mean_scaled_row = (1.0 - self.truncation_ratio) * mean_row
        # TODO(synk): second (decoder) mapping network / decoder_latent_mean of the full
        # StyleSDF generator is not implemented; a single mapping network is used.

        # ---- pack all B-independent weights into two slabs (few DMAs, static slices) ----
        lay, wrows = _wmat_layout(L, D)
        blocks = [
            self.map_w_t.reshape(L * D, D),
            self.aff1_w_t,
            self.conv_w,
            self.conv_w_sq,
            self.aff2_w,
            self.map_b_rows,
            self.mean_scaled_row,
            self.aff1_b_row,
        ]
        wmat = jnp.concatenate(blocks, axis=0)
        pad = wrows - wmat.shape[0]
        if pad:
            wmat = jnp.concatenate([wmat, jnp.zeros((pad, D), jnp.float32)], axis=0)
        self.wmat = wmat                                                  # (wrows, D)
        self.cvec = jnp.concatenate([self.aff2_b_col, self.conv_b_col], axis=0)  # (2C, 1)

    # ---- plain-JAX mapping network (init-time mean latent only) ----------
    def _mapping_ref(self, z):
        x = z * jax.lax.rsqrt(jnp.mean(z * z, axis=-1, keepdims=True) + 1e-8)
        for l in range(self.n_mlp):
            x = _leaky_relu_sqrt2(x @ self.map_w_t[l] + self.map_b_rows[l][None, :])
        return x

    # ---- fused Pallas call ------------------------------------------------
    def _fused_call(self, z):
        B, D = z.shape
        C = self.feat_ch
        P = self.out_res * self.out_res
        out_rows = ((3 * B + 7) // 8) * 8

        # B-dependent toRGB pack: block-diag kron(I_B, 0.5*rgb_w) + stacked bias column
        rgb_base = jnp.kron(jnp.eye(B, dtype=jnp.float32), self.rgb_w_pp)     # (3B, B*C)
        rgb_base = jnp.pad(rgb_base, ((0, out_rows - 3 * B), (0, 0)))
        rgb_bias = jnp.tile(self.rgb_b_pp, (B, 1))                            # (3B, 1)
        rgb_bias = jnp.pad(rgb_bias, ((0, out_rows - 3 * B), (0, B * C - 1)))
        rgb_pack = jnp.concatenate([rgb_base, rgb_bias], axis=0)              # (2*out_rows, B*C)

        kernel = functools.partial(
            fused_forward_kernel, n_layers=self.n_mlp, batch=B, dim=D,
            out_rows=out_rows, trunc=self.truncation_ratio)

        def full(shape):
            n = len(shape)
            return pl.BlockSpec(shape, lambda i, _n=n: (0,) * _n)

        return pl.pallas_call(
            kernel,
            out_shape=jax.ShapeDtypeStruct((out_rows, P), jnp.float32),
            grid=(1,),
            in_specs=[
                full(z.shape),                 # (B, D)
                full(self.const_input.shape),  # (C, P)
                full(self.wmat.shape),         # packed weight slab
                full(self.cvec.shape),         # packed column biases
                full(rgb_pack.shape),          # block-diag toRGB pack
            ],
            out_specs=full((out_rows, P)),
            compiler_params=pltpu.CompilerParams(
                dimension_semantics=("arbitrary",)),
        )(z, self.const_input, self.wmat, self.cvec, rgb_pack)

    # ---- forward -----------------------------------------------------------
    def __call__(self, z):
        B = z.shape[0]
        cam_ext, focals, near, far, locations = generate_camera_params_jax(
            self.out_res, B, fov_ang=self.fov, dist_radius=self.dist_radius)
        # TODO(synk): the SDF volume renderer (ray marching over cam_ext/focals/near/far)
        # has no compact Pallas equivalent here; the decoder path below synthesizes the
        # image directly from the truncated latent.
        del cam_ext, focals, near, far, locations

        out = self._fused_call(z)                    # (out_rows, H*W), rows 0:3B valid
        H = W = self.out_res
        return out[:3 * B].reshape(B, 3, H, W)       # NCHW, matching PyTorch output


# --------------------------------------------------------------------------
# Pure-JAX reference of the same math (for correctness check in __main__)
# --------------------------------------------------------------------------
def reference_forward(model, z):
    t = model.truncation_ratio
    w = model._mapping_ref(z)                        # (B, D)
    w = t * w + model.mean_scaled_row
    B = z.shape[0]
    H = W = model.out_res
    outs = []
    for b in range(B):
        wb = w[b]
        s1 = model.aff1_w_t.T @ wb + model.aff1_b_row[0]                 # (C,)
        s2 = model.aff2_w @ wb + model.aff2_b_col[:, 0]                  # (C,)
        xmod = model.const_input * s1[:, None]                           # (C, P)
        y = model.conv_w @ xmod
        demod = jax.lax.rsqrt(
            jnp.sum((model.conv_w * s1[None, :]) ** 2, axis=1) + 1e-8)   # (C,)
        y = y * demod[:, None] + model.conv_b_col
        y = _leaky_relu_sqrt2(y)
        rgb = model.rgb_w @ (y * s2[:, None]) + model.rgb_b              # (3, P)
        outs.append((rgb + 1.0) * 0.5)
    return jnp.stack(outs, 0).reshape(B, 3, H, W)


if __name__ == "__main__":
    B = 2
    model = StyleSDFWrapperPallas("ffhq", sample_truncation=0.7,
                                  style_dim=32, n_mlp=3, out_res=16, feat_ch=32,
                                  seed=0)
    z = random.normal(random.PRNGKey(0), (B, model.style_dim), jnp.float32)

    img = model(z)
    jax.block_until_ready(img)
    assert img.shape == (B, 3, 16, 16) and img.dtype == jnp.float32

    ref = reference_forward(model, z)
    jax.block_until_ready(ref)
    assert jnp.allclose(img, ref, atol=1e-3, rtol=1e-3), "kernel/reference mismatch"

    print("KERNEL_OK")
</pallas_src>

<mosaic_0001>
module attributes {stable_mosaic.version = 11 : i64} {
  func.func @fused_forward_kernel(%arg0: i32, %arg1: memref<2x32xf32, #tpu.memory_space<vmem>>, %arg2: memref<32x256xf32, #tpu.memory_space<vmem>>, %arg3: memref<232x32xf32, #tpu.memory_space<vmem>>, %arg4: memref<64x1xf32, #tpu.memory_space<vmem>>, %arg5: memref<16x64xf32, #tpu.memory_space<vmem>>, %arg6: memref<8x256xf32, #tpu.memory_space<vmem>>) attributes {dimension_semantics = [#tpu.dimension_semantics<arbitrary>], iteration_bounds = array<i64: 1>, scalar_prefetch = 0 : i64, scratch_operands = 0 : i64, tpu.core_type = #tpu.core_type<tc>, window_params = [{pipeline_mode = #tpu.pipeline_mode<synchronous>, transform_indices = @transform_0, window_bounds = array<i64: 2, 32>}, {pipeline_mode = #tpu.pipeline_mode<synchronous>, transform_indices = @transform_1, window_bounds = array<i64: 32, 256>}, {pipeline_mode = #tpu.pipeline_mode<synchronous>, transform_indices = @transform_2, window_bounds = array<i64: 232, 32>}, {pipeline_mode = #tpu.pipeline_mode<synchronous>, transform_indices = @transform_3, window_bounds = array<i64: 64, 1>}, {pipeline_mode = #tpu.pipeline_mode<synchronous>, transform_indices = @transform_4, window_bounds = array<i64: 16, 64>}, {pipeline_mode = #tpu.pipeline_mode<synchronous>, transform_indices = @transform_5, window_bounds = array<i64: 8, 256>}]} {
    %c0 = arith.constant 0 : index
    %c0_0 = arith.constant 0 : index
    %0 = vector.load %arg1[%c0, %c0_0] : memref<2x32xf32, #tpu.memory_space<vmem>>, vector<2x32xf32>
    %1 = arith.mulf %0, %0 : vector<2x32xf32>
    %cst = arith.constant dense<0.000000e+00> : vector<2xf32>
    %2 = vector.multi_reduction <add>, %1, %cst [1] : vector<2x32xf32> to vector<2xf32>
    %3 = vector.shape_cast %2 : vector<2xf32> to vector<2x1xf32>
    %cst_1 = arith.constant 3.200000e+01 : f32
    %4 = vector.broadcast %cst_1 : f32 to vector<2x1xf32>
    %5 = arith.divf %3, %4 : vector<2x1xf32>
    %cst_2 = arith.constant 9.99999993E-9 : f32
    %6 = vector.broadcast %cst_2 : f32 to vector<2x1xf32>
    %7 = arith.addf %5, %6 : vector<2x1xf32>
    %8 = math.rsqrt %7 : vector<2x1xf32>
    %9 = vector.broadcast %8 : vector<2x1xf32> to vector<2x32xf32>
    %10 = arith.mulf %0, %9 : vector<2x32xf32>
    %c224 = arith.constant 224 : index
    %c0_3 = arith.constant 0 : index
    %11 = vector.load %arg3[%c224, %c0_3] : memref<232x32xf32, #tpu.memory_space<vmem>>, vector<8x32xf32>
    %c0_4 = arith.constant 0 : index
    %c0_5 = arith.constant 0 : index
    %12 = vector.load %arg3[%c0_4, %c0_5] : memref<232x32xf32, #tpu.memory_space<vmem>>, vector<32x32xf32>
    %13 = vector.extract_strided_slice %11 {offsets = [0, 0], sizes = [1, 32], strides = [1, 1]} : vector<8x32xf32> to vector<1x32xf32>
    %cst_6 = arith.constant dense<0.000000e+00> : vector<2x32xf32>
    %14 = tpu.matmul %10, %12, %cst_6 {dimension_numbers = #tpu.dot_dimension_numbers<[1], [0], [0], [1], [0, 0, 1, 1], [], []>} : vector<2x32xf32>, vector<32x32xf32>, vector<2x32xf32> -> vector<2x32xf32>
    %15 = vector.broadcast %13 : vector<1x32xf32> to vector<2x32xf32>
    %16 = arith.addf %14, %15 : vector<2x32xf32>
    %cst_7 = arith.constant 0.000000e+00 : f32
    %17 = vector.broadcast %cst_7 : f32 to vector<2x32xf32>
    %18 = arith.cmpf oge, %16, %17 : vector<2x32xf32>
    %cst_8 = arith.constant 2.000000e-01 : f32
    %19 = vector.broadcast %cst_8 : f32 to vector<2x32xf32>
    %20 = arith.mulf %19, %16 : vector<2x32xf32>
    %21 = arith.select %18, %16, %20 : vector<2x32xi1>, vector<2x32xf32>
    %cst_9 = arith.constant 1.41421354 : f32
    %22 = vector.broadcast %cst_9 : f32 to vector<2x32xf32>
    %23 = arith.mulf %21, %22 : vector<2x32xf32>
    %c32 = arith.constant 32 : index
    %c0_10 = arith.constant 0 : index
    %24 = vector.load %arg3[%c32, %c0_10] : memref<232x32xf32, #tpu.memory_space<vmem>>, vector<32x32xf32>
    %25 = vector.extract_strided_slice %11 {offsets = [1, 0], sizes = [1, 32], strides = [1, 1]} : vector<8x32xf32> to vector<1x32xf32>
    %cst_11 = arith.constant dense<0.000000e+00> : vector<2x32xf32>
    %26 = tpu.matmul %23, %24, %cst_11 {dimension_numbers = #tpu.dot_dimension_numbers<[1], [0], [0], [1], [0, 0, 1, 1], [], []>} : vector<2x32xf32>, vector<32x32xf32>, vector<2x32xf32> -> vector<2x32xf32>
    %27 = vector.broadcast %25 : vector<1x32xf32> to vector<2x32xf32>
    %28 = arith.addf %26, %27 : vector<2x32xf32>
    %cst_12 = arith.constant 0.000000e+00 : f32
    %29 = vector.broadcast %cst_12 : f32 to vector<2x32xf32>
    %30 = arith.cmpf oge, %28, %29 : vector<2x32xf32>
    %cst_13 = arith.constant 2.000000e-01 : f32
    %31 = vector.broadcast %cst_13 : f32 to vector<2x32xf32>
    %32 = arith.mulf %31, %28 : vector<2x32xf32>
    %33 = arith.select %30, %28, %32 : vector<2x32xi1>, vector<2x32xf32>
    %cst_14 = arith.constant 1.41421354 : f32
    %34 = vector.broadcast %cst_14 : f32 to vector<2x32xf32>
    %35 = arith.mulf %33, %34 : vector<2x32xf32>
    %c64 = arith.constant 64 : index
    %c0_15 = arith.constant 0 : index
    %36 = vector.load %arg3[%c64, %c0_15] : memref<232x32xf32, #tpu.memory_space<vmem>>, vector<32x32xf32>
    %37 = vector.extract_strided_slice %11 {offsets = [2, 0], sizes = [1, 32], strides = [1, 1]} : vector<8x32xf32> to vector<1x32xf32>
    %cst_16 = arith.constant dense<0.000000e+00> : vector<2x32xf32>
    %38 = tpu.matmul %35, %36, %cst_16 {dimension_numbers = #tpu.dot_dimension_numbers<[1], [0], [0], [1], [0, 0, 1, 1], [], []>} : vector<2x32xf32>, vector<32x32xf32>, vector<2x32xf32> -> vector<2x32xf32>
    %39 = vector.broadcast %37 : vector<1x32xf32> to vector<2x32xf32>
    %40 = arith.addf %38, %39 : vector<2x32xf32>
    %cst_17 = arith.constant 0.000000e+00 : f32
    %41 = vector.broadcast %cst_17 : f32 to vector<2x32xf32>
    %42 = arith.cmpf oge, %40, %41 : vector<2x32xf32>
    %cst_18 = arith.constant 2.000000e-01 : f32
    %43 = vector.broadcast %cst_18 : f32 to vector<2x32xf32>
    %44 = arith.mulf %43, %40 : vector<2x32xf32>
    %45 = arith.select %42, %40, %44 : vector<2x32xi1>, vector<2x32xf32>
    %cst_19 = arith.constant 1.41421354 : f32
    %46 = vector.broadcast %cst_19 : f32 to vector<2x32xf32>
    %47 = arith.mulf %45, %46 : vector<2x32xf32>
    %cst_20 = arith.constant 0.699999988 : f32
    %48 = vector.broadcast %cst_20 : f32 to vector<2x32xf32>
    %49 = arith.mulf %48, %47 : vector<2x32xf32>
    %50 = vector.extract_strided_slice %11 {offsets = [3, 0], sizes = [1, 32], strides = [1, 1]} : vector<8x32xf32> to vector<1x32xf32>
    %51 = vector.broadcast %50 : vector<1x32xf32> to vector<2x32xf32>
    %52 = arith.addf %49, %51 : vector<2x32xf32>
    %c96 = arith.constant 96 : index
    %c0_21 = arith.constant 0 : index
    %53 = vector.load %arg3[%c96, %c0_21] : memref<232x32xf32, #tpu.memory_space<vmem>>, vector<32x32xf32>
    %cst_22 = arith.constant dense<0.000000e+00> : vector<2x32xf32>
    %54 = tpu.matmul %52, %53, %cst_22 {dimension_numbers = #tpu.dot_dimension_numbers<[1], [0], [0], [1], [0, 0, 1, 1], [], []>} : vector<2x32xf32>, vector<32x32xf32>, vector<2x32xf32> -> vector<2x32xf32>
    %55 = vector.extract_strided_slice %11 {offsets = [4, 0], sizes = [1, 32], strides = [1, 1]} : vector<8x32xf32> to vector<1x32xf32>
    %56 = vector.broadcast %55 : vector<1x32xf32> to vector<2x32xf32>
    %57 = arith.addf %54, %56 : vector<2x32xf32>
    %c192 = arith.constant 192 : index
    %c0_23 = arith.constant 0 : index
    %58 = vector.load %arg3[%c192, %c0_23] : memref<232x32xf32, #tpu.memory_space<vmem>>, vector<32x32xf32>
    %cst_24 = arith.constant dense<0.000000e+00> : vector<32x2xf32>
    %59 = tpu.matmul %58, %52, %cst_24 {dimension_numbers = #tpu.dot_dimension_numbers<[1], [1], [0], [0], [0, 0, 1, 0], [], []>} : vector<32x32xf32>, vector<2x32xf32>, vector<32x2xf32> -> vector<32x2xf32>
    %c0_25 = arith.constant 0 : index
    %c0_26 = arith.constant 0 : index
    %60 = vector.load %arg4[%c0_25, %c0_26] : memref<64x1xf32, #tpu.memory_space<vmem>>, vector<32x1xf32>
    %61 = vector.broadcast %60 : vector<32x1xf32> to vector<32x2xf32>
    %62 = arith.addf %59, %61 : vector<32x2xf32>
    %c160 = arith.constant 160 : index
    %c0_27 = arith.constant 0 : index
    %63 = vector.load %arg3[%c160, %c0_27] : memref<232x32xf32, #tpu.memory_space<vmem>>, vector<32x32xf32>
    %64 = arith.mulf %57, %57 : vector<2x32xf32>
    %cst_28 = arith.constant dense<0.000000e+00> : vector<32x2xf32>
    %65 = tpu.matmul %63, %64, %cst_28 {dimension_numbers = #tpu.dot_dimension_numbers<[1], [1], [0], [0], [0, 0, 1, 0], [], []>} : vector<32x32xf32>, vector<2x32xf32>, vector<32x2xf32> -> vector<32x2xf32>
    %cst_29 = arith.constant 9.99999993E-9 : f32
    %66 = vector.broadcast %cst_29 : f32 to vector<32x2xf32>
    %67 = arith.addf %65, %66 : vector<32x2xf32>
    %68 = math.rsqrt %67 : vector<32x2xf32>
    %c128 = arith.constant 128 : index
    %c0_30 = arith.constant 0 : index
    %69 = vector.load %arg3[%c128, %c0_30] : memref<232x32xf32, #tpu.memory_space<vmem>>, vector<32x32xf32>
    %70 = vector.extract_strided_slice %57 {offsets = [0, 0], sizes = [1, 32], strides = [1, 1]} : vector<2x32xf32> to vector<1x32xf32>
    %71 = vector.broadcast %70 : vector<1x32xf32> to vector<32x32xf32>
    %72 = arith.mulf %69, %71 : vector<32x32xf32>
    %73 = vector.extract_strided_slice %68 {offsets = [0, 0], sizes = [32, 1], strides = [1, 1]} : vector<32x2xf32> to vector<32x1xf32>
    %74 = vector.broadcast %73 : vector<32x1xf32> to vector<32x32xf32>
    %75 = arith.mulf %72, %74 : vector<32x32xf32>
    %76 = vector.extract_strided_slice %57 {offsets = [1, 0], sizes = [1, 32], strides = [1, 1]} : vector<2x32xf32> to vector<1x32xf32>
    %77 = vector.broadcast %76 : vector<1x32xf32> to vector<32x32xf32>
    %78 = arith.mulf %69, %77 : vector<32x32xf32>
    %79 = vector.extract_strided_slice %68 {offsets = [0, 1], sizes = [32, 1], strides = [1, 1]} : vector<32x2xf32> to vector<32x1xf32>
    %80 = vector.broadcast %79 : vector<32x1xf32> to vector<32x32xf32>
    %81 = arith.mulf %78, %80 : vector<32x32xf32>
    %82 = tpu.concatenate %75, %81 in 0 : vector<32x32xf32>, vector<32x32xf32> -> vector<64x32xf32>
    %c32_31 = arith.constant 32 : index
    %c0_32 = arith.constant 0 : index
    %83 = vector.load %arg4[%c32_31, %c0_32] : memref<64x1xf32, #tpu.memory_space<vmem>>, vector<32x1xf32>
    %84 = tpu.concatenate %83, %83 in 0 : vector<32x1xf32>, vector<32x1xf32> -> vector<64x1xf32>
    %c0_33 = arith.constant 0 : index
    %c0_34 = arith.constant 0 : index
    %85 = vector.load %arg2[%c0_33, %c0_34] : memref<32x256xf32, #tpu.memory_space<vmem>>, vector<32x256xf32>
    %cst_35 = arith.constant dense<0.000000e+00> : vector<64x256xf32>
    %86 = tpu.matmul %82, %85, %cst_35 {dimension_numbers = #tpu.dot_dimension_numbers<[1], [0], [0], [1], [0, 0, 1, 1], [], []>} : vector<64x32xf32>, vector<32x256xf32>, vector<64x256xf32> -> vector<64x256xf32>
    %87 = vector.broadcast %84 : vector<64x1xf32> to vector<64x256xf32>
    %88 = arith.addf %86, %87 : vector<64x256xf32>
    %cst_36 = arith.constant 0.000000e+00 : f32
    %89 = vector.broadcast %cst_36 : f32 to vector<64x256xf32>
    %90 = arith.cmpf oge, %88, %89 : vector<64x256xf32>
    %cst_37 = arith.constant 2.000000e-01 : f32
    %91 = vector.broadcast %cst_37 : f32 to vector<64x256xf32>
    %92 = arith.mulf %91, %88 : vector<64x256xf32>
    %93 = arith.select %90, %88, %92 : vector<64x256xi1>, vector<64x256xf32>
    %cst_38 = arith.constant 1.41421354 : f32
    %94 = vector.broadcast %cst_38 : f32 to vector<64x256xf32>
    %95 = arith.mulf %93, %94 : vector<64x256xf32>
    %96 = vector.extract_strided_slice %62 {offsets = [0, 0], sizes = [32, 1], strides = [1, 1]} : vector<32x2xf32> to vector<32x1xf32>
    %97 = vector.extract_strided_slice %62 {offsets = [0, 1], sizes = [32, 1], strides = [1, 1]} : vector<32x2xf32> to vector<32x1xf32>
    %98 = tpu.concatenate %96, %97 in 0 : vector<32x1xf32>, vector<32x1xf32> -> vector<64x1xf32>
    %c0_39 = arith.constant 0 : index
    %c0_40 = arith.constant 0 : index
    %99 = vector.load %arg5[%c0_39, %c0_40] : memref<16x64xf32, #tpu.memory_space<vmem>>, vector<8x64xf32>
    %c8 = arith.constant 8 : index
    %c0_41 = arith.constant 0 : index
    %100 = vector.load %arg5[%c8, %c0_41] : memref<16x64xf32, #tpu.memory_space<vmem>>, vector<8x1xf32>
    %101 = vector.broadcast %98 : vector<64x1xf32> to vector<64x256xf32>
    %102 = arith.mulf %95, %101 : vector<64x256xf32>
    %cst_42 = arith.constant dense<0.000000e+00> : vector<8x256xf32>
    %103 = tpu.matmul %99, %102, %cst_42 {dimension_numbers = #tpu.dot_dimension_numbers<[1], [0], [0], [1], [0, 0, 1, 1], [], []>} : vector<8x64xf32>, vector<64x256xf32>, vector<8x256xf32> -> vector<8x256xf32>
    %104 = vector.broadcast %100 : vector<8x1xf32> to vector<8x256xf32>
    %105 = arith.addf %103, %104 : vector<8x256xf32>
    %c0_43 = arith.constant 0 : index
    %c0_44 = arith.constant 0 : index
    %106 = vector.load %arg6[%c0_43, %c0_44] : memref<8x256xf32, #tpu.memory_space<vmem>>, vector<8x256xf32>
    tpu.vector_store %arg6[%c0_43, %c0_44], %105 {strides = array<i32>} : memref<8x256xf32, #tpu.memory_space<vmem>>, vector<8x256xf32>,
    return
  }
  func.func @transform_0(%arg0: i32) -> (i32, i32) {
    %c0_i32 = arith.constant 0 : i32
    %c0_i32_0 = arith.constant 0 : i32
    %c0_i32_1 = arith.constant 0 : i32
    return %c0_i32, %c0_i32_0 : i32, i32
  }
  func.func @transform_1(%arg0: i32) -> (i32, i32) {
    %c0_i32 = arith.constant 0 : i32
    %c0_i32_0 = arith.constant 0 : i32
    %c0_i32_1 = arith.constant 0 : i32
    return %c0_i32, %c0_i32_0 : i32, i32
  }
  func.func @transform_2(%arg0: i32) -> (i32, i32) {
    %c0_i32 = arith.constant 0 : i32
    %c0_i32_0 = arith.constant 0 : i32
    %c0_i32_1 = arith.constant 0 : i32
    return %c0_i32, %c0_i32_0 : i32, i32
  }
  func.func @transform_3(%arg0: i32) -> (i32, i32) {
    %c0_i32 = arith.constant 0 : i32
    %c0_i32_0 = arith.constant 0 : i32
    %c0_i32_1 = arith.constant 0 : i32
    return %c0_i32, %c0_i32_0 : i32, i32
  }
  func.func @transform_4(%arg0: i32) -> (i32, i32) {
    %c0_i32 = arith.constant 0 : i32
    %c0_i32_0 = arith.constant 0 : i32
    %c0_i32_1 = arith.constant 0 : i32
    return %c0_i32, %c0_i32_0 : i32, i32
  }
  func.func @transform_5(%arg0: i32) -> (i32, i32) {
    %c0_i32 = arith.constant 0 : i32
    %c0_i32_0 = arith.constant 0 : i32
    %c0_i32_1 = arith.constant 0 : i32
    return %c0_i32, %c0_i32_0 : i32, i32
  }
}

</mosaic_0001>

<bundles_post_ra>
// kernel: tpu_custom_call.1
= control target key start
LH: loop header
LB: loop body
LE: loop exit
PB: predicated region body
PF: predicated region fallthrough
CT: control target
= control target key end

     0   :  { %vm23_vm0 = vcmask 254976   ;;  %s1571_s0 = inlined_call_operand.vmem [shape: f32[2,32], index: 0, kind: input, shape index: {}]   ;;  %s1572_s1 = inlined_call_operand.vmem [shape: f32[32,256], index: 1, kind: input, shape index: {}]   ;;  %s1573_s2 = inlined_call_operand.vmem [shape: f32[232,32], index: 2, kind: input, shape index: {}]   ;;  %s1574_s3 = inlined_call_operand.vmem [shape: f32[64,1], index: 3, kind: input, shape index: {}]   ;;  %s1575_s4 = inlined_call_operand.vmem [shape: f32[16,64], index: 4, kind: input, shape index: {}]   ;;  %s1576_s5 = inlined_call_operand.hbm [shape: f32[8,256], index: 5, kind: output, shape index: {}]  }
   0x1   :  { %v21_v0 = vld [vmem:[%s1571_s0] sm:$0x3] }
   0x2   :  { %10 = vsyncpa [#allocation3], 0  ;;  %v22_v1 = vmul.f32 %v21_v0, %v21_v0  ;;  %v33_v3 = vld [vmem:[%s1573_s2] sm:$0xff]  ;;  %v34_v4 = vld [vmem:[%s1573_s2 + $0x8] sm:$0xff]  ;;  %v1271_v6 = vmov 0.0|0.0   ;;  %vm1272_vm1 = vmmov 0   ;;  %v37_v22 = vlaneseq }
   0x3   :  { %v35_v5 = vld [vmem:[%s1573_s2 + $0x10] sm:$0xff]  ;;  %1178 = vmatprep.subr.bf16.mxu1 %v1271_v6  ;;  %v1179_v7 = vpack.c.bf16 %v34_v4, %v33_v3  ;;  %v36_v8 = vld [vmem:[%s1573_s2 + $0x18] sm:$0xff]  ;;  %v1273_v9 = vmov 0.0   ;;  %1190 = vmatprep.subr.bf16.mxu0 %v1271_v6  ;;  %vm41_vm2 = vcmask 261120   ;;  %v119_v16 = vld [vmem:[%s1573_s2 + $0x20] sm:$0xff] }
   0x4   :  { %v24_v2 = vsel %vm23_vm0, %v22_v1, 0.0  ;;  %1126 = vmatprep.mubr.msk.f32.mxu1 %vm1272_vm1, %v1273_v9  ;;  %1148 = vmatprep.mubr.msk.f32.mxu0 %vm1272_vm1, %v1273_v9  ;;  %v1182_v10 = vpack.c.bf16 %v36_v8, %v35_v5  ;;  %v120_v17 = vld [vmem:[%s1573_s2 + $0x28] sm:$0xff]  ;;  %v121_v19 = vld [vmem:[%s1573_s2 + $0x30] sm:$0xff]  ;;  %v122_v20 = vld [vmem:[%s1573_s2 + $0x38] sm:$0xff]  ;;  %v1348_v23 = vshrl.u32 %v37_v22, 7 }
   0x5   :  { %25 = vadd.xlane.f32.xlu0 %v24_v2  ;;  %1180 = vmatpush3.bf16.msra.mxu1 %v1179_v7  ;;  %v1185_v18 = vpack.c.bf16 %v120_v17, %v119_v16  ;;  %v1188_v21 = vpack.c.bf16 %v122_v20, %v121_v19  ;;  %v1354_v25 = vld [vmem:[%s1573_s2 + $0xe0] sm:$0xff]  ;;  %v205_v34 = vld [vmem:[%s1573_s2 + $0x48] sm:$0xff]  ;;  %v206_v36 = vld [vmem:[%s1573_s2 + $0x50] sm:$0xff]  ;;  %v1274_v16 = vmov 0  }
   0x6   :  { %1181 = vmatprep.subr.bf16.mxu1 %v1271_v6  ;;  %v39_v24 = vsub.s32 0, %v1348_v23  ;;  %v204_v33 = vld [vmem:[%s1573_s2 + $0x40] sm:$0xff]  ;;  %v207_v37 = vld [vmem:[%s1573_s2 + $0x58] sm:$0xff]  ;;  %v125_v39 = vsub.s32 1, %v1348_v23  ;;  %v296_v48 = vld [vmem:[%s1573_s2 + $0x68] sm:$0xff]  ;;  %v210_v53 = vsub.s32 2, %v1348_v23  ;;  %1234 = vset.pattern.permute.xlu1 %v1274_v16 }
   0x7   :  { %v1191_v35 = vpack.c.bf16 %v205_v34, %v204_v33  ;;  %v1194_v38 = vpack.c.bf16 %v207_v37, %v206_v36  ;;  %v295_v47 = vld [vmem:[%s1573_s2 + $0x60] sm:$0xff]  ;;  %v297_v50 = vld [vmem:[%s1573_s2 + $0x70] sm:$0xff]  ;;  %v298_v51 = vld [vmem:[%s1573_s2 + $0x78] sm:$0xff]  ;;  %v292_v58 = vsub.s32 3, %v1348_v23  ;;  %1233 = vset.pattern.permute.xlu0 %v1274_v16 }
   0x8   :  { %v40_v26 = vrot.slane %v1354_v25, %v39_v24  ;;  %v126_v40 = vrot.slane %v1354_v25, %v125_v39  ;;  %v1197_v49 = vpack.c.bf16 %v296_v48, %v295_v47  ;;  %v1200_v52 = vpack.c.bf16 %v298_v51, %v297_v50  ;;  %v501_v1 = vld [vmem:[%s1573_s2 + $0xa0] sm:$0xff]  ;;  %v377_v3 = vld [vmem:[%s1573_s2 + $0xc8] sm:$0xff]  ;;  %v378_v4 = vld [vmem:[%s1573_s2 + $0xd0] sm:$0xff] }
   0x9   :  { %1183 = vmatpush3.bf16.msra.mxu1 %v1182_v10  ;;  %1192 = vmatpush3.bf16.msra.mxu0 %v1191_v35  ;;  %v211_v54 = vrot.slane %v1354_v25, %v210_v53  ;;  %v293_v62 = vrot.slane %v1354_v25, %v292_v58  ;;  %v376_v2 = vld [vmem:[%s1573_s2 + $0xc0] sm:$0xff]  ;;  %v379_v5 = vld [vmem:[%s1573_s2 + $0xd8] sm:$0xff]  ;;  %v679_v17 = vld [vmem:[%s1572_s1 + $0x8] sm:$0xff] }
   0xa   :  { %1184 = vmatprep.subr.bf16.mxu1 %v1271_v6  ;;  %1193 = vmatprep.subr.bf16.mxu0 %v1271_v6  ;;  %v678_v19 = vld [vmem:[%s1572_s1] sm:$0xff]  ;;  %v683_v22 = vld [vmem:[%s1572_s1 + $0x28] sm:$0xff]  ;;  %v684_v37 = vld [vmem:[%s1572_s1 + $0x30] sm:$0xff] }
   0xb   :  { %v682_v36 = vld [vmem:[%s1572_s1 + $0x20] sm:$0xff]  ;;  %v381_v48 = vld [vmem:[%s1574_s3 + $0x8] sm:$0xff]  ;;  %v382_v50 = vld [vmem:[%s1574_s3 + $0x10] sm:$0xff] }
   0xd   :  { %1195 = vmatpush3.bf16.msra.mxu0 %v1194_v38  ;;  %v1208_v38 = vpack.c.bf16 %v684_v37, %v682_v36 }
  0x92   :  { %v26_v11 = vpop.xlane.xlu0 %25 }
  0x93   :  { %v28_v12 = vmul.f32 0.03125, %v26_v11 }
  0x95   :  { %v29_v13 = vadd.f32 1e-08, %v28_v12 }
  0x97   :  { %1237 = vrsqrt.f32 %v29_v13  ;;  %v502_v13 = vld [vmem:[%s1573_s2 + $0xa8] sm:$0xff] }
  0xa1   :  { %v1238_v14 = vpop.eup %1237 }
  0xa2   :  { %v31_v15 = vmul.f32 %v1238_v14, %v21_v0  ;;  %v503_v14 = vld [vmem:[%s1573_s2 + $0xb0] sm:$0xff] }
  0xa4   :  { %1127 = vmatmul.mubr.msk.f32.vlgmr.msra.gmra.mrb[0].mxu1 %vm41_vm2, %v31_v15  ;;  %v504_v15 = vld [vmem:[%s1573_s2 + $0xb8] sm:$0xff] }
  0xa5   :  { %1137 = vmatprep.mubr.msk.f32.mxu1 %vm1272_vm1, %v1273_v9  ;;  %1186 = vmatpush3.bf16.msra.mxu1 %v1185_v18  ;;  %v681_v18 = vld [vmem:[%s1572_s1 + $0x18] sm:$0xff] }
  0xa6   :  { %1187 = vmatprep.subr.bf16.mxu1 %v1271_v6  ;;  %v1202_v20 = vpack.c.bf16 %v681_v18, %v679_v17 }
  0xa9   :  { %1189 = vmatpush3.bf16.msra.mxu1 %v1188_v21  ;;  %v680_v21 = vld [vmem:[%s1572_s1 + $0x10] sm:$0xff] }
  0xaa   :  { %1196 = vmatprep.subr.bf16.mxu1 %v1271_v6 }
 0x177   :  { %v111_v27 = vpop.f32.mrb[0].mxu1 }
 0x178   :  { %v112_v28 = vadd.f32 %v111_v27, %v40_v26  ;;  %v1128_v29 = vpop.f32.mrb[1].mxu1  ;;  %v1204_v26 = vpack.c.bf16 %v680_v21, %v678_v19 }
 0x17a   :  { %vm115_vm3 = vcmp.ge.f32.partialorder %v112_v28, 0.0  ;;  %v116_v30 = vmul.f32 0.2, %v112_v28 }
 0x17c   :  { %v117_v31 = vsel %vm115_vm3, %v112_v28, %v116_v30 }
 0x17d   :  { %v118_v32 = vmul.f32 1.4142135, %v117_v31 }
 0x17f   :  { %1138 = vmatmul.mubr.msk.f32.vlgmr.msra.gmra.mrb[2].mxu1 %vm41_vm2, %v118_v32 }
 0x180   :  { %1159 = vmatprep.mubr.msk.f32.mxu1 %vm1272_vm1, %v1273_v9  ;;  %1198 = vmatpush3.bf16.msra.mxu1 %v1197_v49 }
 0x181   :  { %1199 = vmatprep.subr.bf16.mxu1 %v1271_v6  ;;  %v301_v6 = vsub.s32 4, %v1348_v23 }
 0x183   :  { %v302_v7 = vrot.slane %v1354_v25, %v301_v6  ;;  %v685_v25 = vld [vmem:[%s1572_s1 + $0x38] sm:$0xff]  ;;  %s1277_s1 = smov [#allocation2]  }
 0x184   :  { %1201 = vmatpush3.bf16.msra.mxu1 %v1200_v52  ;;  %v1206_v27 = vpack.c.bf16 %v685_v25, %v683_v22  ;;  %v383_v52 = vld [vmem:[%s1574_s3 + $0x18] sm:$0xff]  ;;  %s1057_s8 = sshll.u32 %s1277_s1, 4  ;;  %s1058_s8 = int_to_ptr.vmem [resolvable:$true] %s1057_s8 }
 0x185   :  { %s1247_s9 = scalar_lea.vmem %s1058_s8, 256  ;;  %p1252_p1 = scmp.lt.s32.totalorder %s1058_s8, %s1058_s8 }
 0x186   :  { %p1248_p0 = scmp.ne.s32.totalorder %s1058_s8, %s1247_s9  ;;  %p1253_p2 = scmp.lt.s32.totalorder %s1247_s9, %s1247_s9 }
 0x188   :  { %p1254_p3 = por %p1253_p2, %p1252_p1 }
 0x18a   :  { %p1255_p4 = pnand %p1254_p3, %p1248_p0 }
 0x252   :  { %v196_v41 = vpop.f32.mrb[2].mxu1 }
 0x253   :  { %v197_v42 = vadd.f32 %v196_v41, %v126_v40  ;;  %v1139_v43 = vpop.f32.mrb[3].mxu1 }
 0x255   :  { %vm200_vm4 = vcmp.ge.f32.partialorder %v197_v42, 0.0  ;;  %v201_v44 = vmul.f32 0.2, %v197_v42 }
 0x257   :  { %v202_v45 = vsel %vm200_vm4, %v197_v42, %v201_v44  ;;  %v1275_v44 = vmov 1  }
 0x258   :  { %v203_v46 = vmul.f32 1.4142135, %v202_v45 }
 0x25a   :  { %1149 = vmatmul.mubr.msk.f32.vlgmr.msra.gmra.mrb[0].mxu0 %vm41_vm2, %v203_v46  ;;  %v380_v46 = vld [vmem:[%s1574_s3] sm:$0xff] }
 0x25b   :  { %1164 = vmatprep.mubr.msk.f32.mxu0 %vm41_vm2, %v376_v2 }
 0x32d   :  { %v281_v55 = vpop.f32.mrb[0].mxu0 }
 0x32e   :  { %v282_v56 = vadd.f32 %v281_v55, %v211_v54  ;;  %v1150_v57 = vpop.f32.mrb[1].mxu0  ;;  %v610_v54 = vld [vmem:[%s1573_s2 + $0x80] sm:$0xff] }
 0x32f   :  { %v611_v57 = vld [vmem:[%s1573_s2 + $0x88] sm:$0xff] }
 0x330   :  { %vm285_vm5 = vcmp.ge.f32.partialorder %v282_v56, 0.0  ;;  %v286_v59 = vmul.f32 0.2, %v282_v56 }
 0x332   :  { %v287_v60 = vsel %vm285_vm5, %v282_v56, %v286_v59 }
 0x333   :  { %v288_v61 = vmul.f32 1.4142135, %v287_v60 }
 0x335   :  { %v289_v63 = vmul.f32 0.7, %v288_v61  ;;  %v612_v61 = vld [vmem:[%s1573_s2 + $0x90] sm:$0xff] }
 0x337   :  { %v294_v0 = vadd.f32 %v293_v62, %v289_v63 }
 0x339   :  { %1160 = vmatmul.mubr.msk.f32.vlgmr.msra.gmra.mrb[4].mxu1 %vm41_vm2, %v294_v0  ;;  %1162 = vmatprep.subr.msk.mxu0 %vm41_vm2, %v294_v0 }
 0x33a   :  { %1163 = vmatpush3.xpose.msk.msra.mxu0 %vm41_vm2, %v294_v0  ;;  %1172 = vmatprep.mubr.msk.f32.mxu1 %vm41_vm2, %v501_v1  ;;  %v613_v0 = vld [vmem:[%s1573_s2 + $0x98] sm:$0xff]  ;;  %s1276_s2 = smov 127  }
 0x33b   :  { %1203 = vmatprep.subr.bf16.mxu0 %v1202_v20 }
 0x33d   :  { %1165 = vmatmul.mubr.msk.f32.vlgmr.msra.gmra.mrb[2].mxu0 %vm41_vm2, %v377_v3 }
 0x33e   :  { %1167 = vmatprep.mubr.msk.f32.mxu0 %vm41_vm2, %v378_v4  ;;  %1205 = vmatpush1.bf16.msra.mxu0 %v1204_v26  ;;  %v674_v26 = vld [vmem:[%s1574_s3 + $0x20] sm:$0xff] }
 0x33f   :  { %1207 = vmatprep.subr.bf16.mxu0 %v1206_v27  ;;  %v676_v27 = vld [vmem:[%s1574_s3 + $0x30] sm:$0xff] }
 0x341   :  { %1168 = vmatmul.mubr.msk.f32.gmra.mrb[4].mxu0 %vm41_vm2, %v379_v5 }
 0x342   :  { %794 = vmatprep.mubr.f32.mxu0 %v1273_v9  ;;  %1209 = vmatpush1.bf16.msra.mxu0 %v1208_v38 }
 0x40c   :  { %v372_v8 = vpop.f32.mrb[4].mxu1 }
 0x40d   :  { %v1423_v10 = vadd.f32 %v372_v8, %v302_v7  ;;  %v1161_v11 = vpop.f32.mrb[5].mxu1 }
 0x40f   :  { %v505_v12 = vmul.f32 %v1423_v10, %v1423_v10  ;;  %v617_v53 = vrot.slane %v1423_v10, %v39_v24  ;;  %v649_v3 = vrot.slane %v1423_v10, %v125_v39 }
 0x410   :  { %v1466_v45 = vpop.f32.mrb[2].mxu0 }
 0x411   :  { %1170 = vmatprep.subr.msk.mxu1 %vm41_vm2, %v505_v12  ;;  %v482_v47 = vpop.f32.mrb[3].mxu0  ;;  %v618_v56 = vmul.f32 %v617_v53, %v610_v54  ;;  %v619_v60 = vmul.f32 %v617_v53, %v611_v57  ;;  %v620_v63 = vmul.f32 %v617_v53, %v612_v61  ;;  %v621_v4 = vmul.f32 %v617_v53, %v613_v0 }
 0x412   :  { %1171 = vmatpush3.xpose.msk.msra.mxu1 %vm41_vm2, %v505_v12  ;;  %v650_v7 = vmul.f32 %v649_v3, %v610_v54  ;;  %v651_v12 = vmul.f32 %v649_v3, %v611_v57  ;;  %v652_v10 = vmul.f32 %v649_v3, %v612_v61 }
 0x414   :  { %v1474_v49 = vpop.f32.mrb[4].mxu0 }
 0x415   :  { %1173 = vmatmul.mubr.msk.f32.vlgmr.msra.gmra.mrb[6].mxu1 %vm41_vm2, %v502_v13  ;;  %v492_v51 = vpop.f32.mrb[5].mxu0 }
 0x416   :  { %1175 = vmatprep.mubr.msk.f32.mxu1 %vm41_vm2, %v503_v14 }
 0x419   :  { %1176 = vmatmul.mubr.msk.f32.gmra.mrb[8].mxu1 %vm41_vm2, %v504_v15  ;;  %v653_v15 = vmul.f32 %v649_v3, %v613_v0 }
 0x41a   :  { %1042 = vmatprep.mubr.f32.mxu1 %v1273_v9 }
 0x4e8   :  { %v1174_v28 = vpop.f32.mrb[6].mxu1 }
 0x4e9   :  { %v593_v29 = vadd.f32 1e-08, %v1174_v28  ;;  %v587_v30 = vpop.f32.mrb[7].mxu1  ;;  %v675_v28 = vld [vmem:[%s1574_s3 + $0x28] sm:$0xff] }
 0x4ea   :  { %v588_v31 = vadd.f32 1e-08, %v587_v30 }
 0x4eb   :  { %1239 = vrsqrt.f32 %v593_v29  ;;  %v677_v29 = vld [vmem:[%s1574_s3 + $0x38] sm:$0xff] }
 0x4ec   :  { %1241 = vrsqrt.f32 %v588_v31  ;;  %v1177_v32 = vpop.f32.mrb[8].mxu1 }
 0x4ed   :  { %v597_v33 = vpop.f32.mrb[9].mxu1  ;;  %v603_v35 = vadd.f32 1e-08, %v1177_v32 }
 0x4ee   :  { %v598_v34 = vadd.f32 1e-08, %v597_v33  ;;  %v920_v33 = vld [vmem:[%s1575_s4 + $0x8] sm:$0xff] }
 0x4f0   :  { %1243 = vrsqrt.f32 %v598_v34 }
 0x4f1   :  { %1245 = vrsqrt.f32 %v603_v35 }
 0x4f5   :  { %v1240_v40 = vpop.eup %1239 }
 0x4f6   :  { %v1242_v41 = vpop.eup %1241  ;;  %629 = vperm.xlu1 %1234, %v1240_v40  }
 0x4f7   :  { %624 = vperm.xlu0 %1233, %v1242_v41  }
 0x4fa   :  { %v1244_v42 = vpop.eup %1243 }
 0x4fb   :  { %634 = vperm.xlu1 %1234, %v1244_v42   ;;  %v1246_v43 = vpop.eup %1245 }
 0x4ff   :  { %639 = vperm.xlu1 %1234, %v1246_v43  }
 0x503   :  { %1235 = vset.pattern.permute.xlu1 %v1275_v44 }
 0x504   :  { %655 = vperm.xlu1 %1235, %v1242_v41  }
 0x508   :  { %659 = vperm.xlu1 %1235, %v1240_v40  }
 0x50c   :  { %663 = vperm.xlu1 %1235, %v1244_v42  }
 0x510   :  { %667 = vperm.xlu1 %1235, %v1246_v43  }
 0x514   :  { %1236 = vset.pattern.permute.xlu1 %v1274_v16 }
 0x515   :  { %386 = vperm.xlu1 %1236, %v380_v46  }
 0x519   :  { %391 = vperm.xlu1 %1236, %v381_v48  }
 0x51d   :  { %396 = vperm.xlu1 %1236, %v382_v50  }
 0x521   :  { %401 = vperm.xlu1 %1236, %v383_v52  }
 0x575   :  { %v630_v55 = vpop.permute.xlu1 %629 }
 0x576   :  { %v625_v58 = vpop.permute.xlu0 %624  ;;  %v643_v62 = vmul.f32 %v630_v55, %v619_v60 }
 0x577   :  { %v642_v59 = vmul.f32 %v625_v58, %v618_v56 }
 0x579   :  { %1079 = vmatmul.mubr.msk.f32.vlgmr.msra.gmra.mrb[6].mxu0 %vm41_vm2, %v642_v59 }
 0x57a   :  { %v635_v24 = vpop.permute.xlu1 %634  ;;  %800 = vmatprep.mubr.f32.mxu0 %v1273_v9 }
 0x57b   :  { %v644_v2 = vmul.f32 %v635_v24, %v620_v63 }
 0x57d   :  { %1080 = vmatmul.mubr.msk.f32.gmra.mrb[8].mxu0 %vm41_vm2, %v643_v62 }
 0x57e   :  { %v640_v1 = vpop.permute.xlu1 %639  ;;  %806 = vmatprep.mubr.f32.mxu0 %v1273_v9 }
 0x57f   :  { %v645_v5 = vmul.f32 %v640_v1, %v621_v4 }
 0x581   :  { %1081 = vmatmul.mubr.msk.f32.gmra.mrb[10].mxu0 %vm41_vm2, %v644_v2 }
 0x582   :  { %812 = vmatprep.mubr.f32.mxu0 %v1273_v9 }
 0x583   :  { %v656_v6 = vpop.permute.xlu1 %655 }
 0x584   :  { %v670_v8 = vmul.f32 %v656_v6, %v650_v7 }
 0x585   :  { %1082 = vmatmul.mubr.msk.f32.gmra.mrb[12].mxu0 %vm41_vm2, %v645_v5 }
 0x586   :  { %818 = vmatprep.mubr.f32.mxu0 %v1273_v9 }
 0x587   :  { %v660_v11 = vpop.permute.xlu1 %659 }
 0x588   :  { %v671_v23 = vmul.f32 %v660_v11, %v651_v12 }
 0x589   :  { %1083 = vmatmul.mubr.msk.f32.gmra.mrb[14].mxu0 %vm41_vm2, %v670_v8 }
 0x58a   :  { %824 = vmatprep.mubr.f32.mxu0 %v1273_v9 }
 0x58b   :  { %v664_v39 = vpop.permute.xlu1 %663 }
 0x58c   :  { %v672_v13 = vmul.f32 %v664_v39, %v652_v10 }
 0x58d   :  { %1084 = vmatmul.mubr.msk.f32.gmra.mrb[16].mxu0 %vm41_vm2, %v671_v23 }
 0x58e   :  { %830 = vmatprep.mubr.f32.mxu0 %v1273_v9 }
 0x58f   :  { %v668_v14 = vpop.permute.xlu1 %667 }
 0x590   :  { %v673_v16 = vmul.f32 %v668_v14, %v653_v15 }
 0x591   :  { %1085 = vmatmul.mubr.msk.f32.gmra.mrb[18].mxu0 %vm41_vm2, %v672_v13 }
 0x592   :  { %836 = vmatprep.mubr.f32.mxu0 %v1273_v9 }
 0x594   :  { %v387_v17 = vpop.permute.xlu1 %386 }
 0x595   :  { %v483_v18 = vadd.f32 %v482_v47, %v387_v17  ;;  %1086 = vmatmul.mubr.msk.f32.gmra.mrb[20].mxu0 %vm41_vm2, %v673_v16 }
 0x597   :  { %911 = vrot.lane.b32.xlu1 %v483_v18, %s1276_s2 }
 0x598   :  { %v392_v19 = vpop.permute.xlu1 %391 }
 0x599   :  { %v488_v20 = vadd.f32 %v1466_v45, %v392_v19 }
 0x59b   :  { %913 = vrot.lane.b32.xlu0 %v488_v20, %s1276_s2 }
 0x59c   :  { %v397_v21 = vpop.permute.xlu1 %396 }
 0x59d   :  { %v493_v22 = vadd.f32 %v492_v51, %v397_v21 }
 0x59f   :  { %915 = vrot.lane.b32.xlu1 %v493_v22, %s1276_s2 }
 0x5a0   :  { %v402_v25 = vpop.permute.xlu1 %401 }
 0x5a1   :  { %v498_v9 = vadd.f32 %v1474_v49, %v402_v25 }
 0x5a3   :  { %688 = vperm.xlu1 %1236, %v674_v26   ;;  %917 = vrot.lane.b32.xlu0 %v498_v9, %s1276_s2 }
 0x5a7   :  { %698 = vperm.xlu1 %1236, %v676_v27   ;;  %693 = vperm.xlu0 %1233, %v675_v28  }
 0x5ab   :  { %922 = vperm.xlu1 %1236, %v483_v18   ;;  %703 = vperm.xlu0 %1233, %v677_v29  }
 0x5af   :  { %930 = vperm.xlu1 %1236, %v493_v22   ;;  %926 = vperm.xlu0 %1233, %v488_v20  }
 0x5b3   :  { %934 = vperm.xlu0 %1233, %v498_v9  }
 0x609   :  { %v912_v30 = vpop.permute.xlu1 %911 }
 0x60a   :  { %938 = vperm.xlu1 %1236, %v912_v30  }
 0x60d   :  { %v914_v31 = vpop.permute.xlu0 %913 }
 0x60e   :  { %942 = vperm.xlu0 %1233, %v914_v31  }
 0x611   :  { %v916_v32 = vpop.permute.xlu1 %915 }
 0x612   :  { %946 = vperm.xlu1 %1236, %v916_v32  }
 0x615   :  { %v918_v34 = vpop.permute.xlu0 %917 }
 0x616   :  { %971 = vperm.xlu1 %1236, %v920_v33   ;;  %950 = vperm.xlu0 %1233, %v918_v34  }
 0x622   :  { %v1532_v35 = vpop.permute.xlu1 %688 }
 0x626   :  { %v1534_v36 = vpop.permute.xlu0 %693  ;;  %v1538_v43 = vpop.permute.xlu1 %698 }
 0x62a   :  { %v1540_v46 = vpop.permute.xlu0 %703  ;;  %v923_v62 = vpop.permute.xlu1 %922 }
 0x62e   :  { %v927_v63 = vpop.permute.xlu0 %926  ;;  %v931_v25 = vpop.permute.xlu1 %930 }
 0x632   :  { %v935_v26 = vpop.permute.xlu0 %934 }
 0x64c   :  { %v796_v37 = vpop.f32.mrb[6].mxu0 }
 0x64d   :  { %v797_v38 = vadd.f32 %v796_v37, %v1532_v35  ;;  %v798_v40 = vpop.f32.mrb[7].mxu0 }
 0x64e   :  { %v799_v41 = vadd.f32 %v798_v40, %v1532_v35 }
 0x64f   :  { %vm843_vm6 = vcmp.ge.f32.partialorder %v797_v38, 0.0  ;;  %v859_v42 = vmul.f32 0.2, %v797_v38 }
 0x650   :  { %vm844_vm7 = vcmp.ge.f32.partialorder %v799_v41, 0.0  ;;  %v860_v44 = vmul.f32 0.2, %v799_v41  ;;  %v802_v45 = vpop.f32.mrb[8].mxu0 }
 0x651   :  { %v875_v47 = vsel %vm843_vm6, %v797_v38, %v859_v42  ;;  %v803_v48 = vadd.f32 %v802_v45, %v1534_v36  ;;  %v804_v49 = vpop.f32.mrb[9].mxu0  ;;  %vm974_vm6 = vcmask 523264  }
 0x652   :  { %v876_v50 = vsel %vm844_vm7, %v799_v41, %v860_v44  ;;  %v805_v51 = vadd.f32 %v804_v49, %v1534_v36  ;;  %v891_v53 = vmul.f32 1.4142135, %v875_v47 }
 0x653   :  { %vm845_vm8 = vcmp.ge.f32.partialorder %v803_v48, 0.0  ;;  %v861_v52 = vmul.f32 0.2, %v803_v48  ;;  %v892_v56 = vmul.f32 1.4142135, %v876_v50 }
 0x654   :  { %vm846_vm9 = vcmp.ge.f32.partialorder %v805_v51, 0.0  ;;  %v862_v54 = vmul.f32 0.2, %v805_v51  ;;  %v808_v55 = vpop.f32.mrb[10].mxu0  ;;  %v953_v2 = vmul.f32 %v923_v62, %v891_v53 }
 0x655   :  { %v877_v57 = vsel %vm845_vm8, %v803_v48, %v861_v52  ;;  %v809_v58 = vadd.f32 %v808_v55, %v1538_v43  ;;  %v810_v59 = vpop.f32.mrb[11].mxu0  ;;  %v954_v11 = vmul.f32 %v923_v62, %v892_v56 }
 0x656   :  { %v893_v60 = vmul.f32 1.4142135, %v877_v57  ;;  %v878_v61 = vsel %vm846_vm9, %v805_v51, %v862_v54  ;;  %v811_v24 = vadd.f32 %v810_v59, %v1538_v43 }
 0x657   :  { %v894_v0 = vmul.f32 1.4142135, %v878_v61  ;;  %vm847_vm10 = vcmp.ge.f32.partialorder %v809_v58, 0.0  ;;  %v863_v1 = vmul.f32 0.2, %v809_v58 }
 0x658   :  { %v955_v3 = vmul.f32 %v927_v63, %v893_v60  ;;  %vm848_vm11 = vcmp.ge.f32.partialorder %v811_v24, 0.0  ;;  %v864_v4 = vmul.f32 0.2, %v811_v24  ;;  %v814_v5 = vpop.f32.mrb[12].mxu0 }
 0x659   :  { %v879_v6 = vsel %vm847_vm10, %v809_v58, %v863_v1  ;;  %v815_v7 = vadd.f32 %v814_v5, %v1540_v46  ;;  %v816_v8 = vpop.f32.mrb[13].mxu0  ;;  %v956_v12 = vmul.f32 %v927_v63, %v894_v0 }
 0x65a   :  { %v880_v23 = vsel %vm848_vm11, %v811_v24, %v864_v4  ;;  %v817_v39 = vadd.f32 %v816_v8, %v1540_v46  ;;  %v1212_v10 = vpack.c.bf16 %v955_v3, %v953_v2  ;;  %v895_v15 = vmul.f32 1.4142135, %v879_v6 }
 0x65b   :  { %vm849_vm12 = vcmp.ge.f32.partialorder %v815_v7, 0.0  ;;  %v865_v13 = vmul.f32 0.2, %v815_v7  ;;  %v1210_v14 = vpack.c.bf16 %v956_v12, %v954_v11  ;;  %v896_v18 = vmul.f32 1.4142135, %v880_v23 }
 0x65c   :  { %vm850_vm13 = vcmp.ge.f32.partialorder %v817_v39, 0.0  ;;  %v866_v16 = vmul.f32 0.2, %v817_v39  ;;  %v820_v17 = vpop.f32.mrb[14].mxu0  ;;  %v957_v27 = vmul.f32 %v931_v25, %v895_v15 }
 0x65d   :  { %v881_v19 = vsel %vm849_vm12, %v815_v7, %v865_v13  ;;  %v822_v20 = vpop.f32.mrb[15].mxu0  ;;  %1211 = vmatprep.subr.bf16.mxu1 %v1210_v14  ;;  %v958_v31 = vmul.f32 %v931_v25, %v896_v18  ;;  %v821_v42 = vadd.f32 %v820_v17, %v1532_v35 }
 0x65e   :  { %v897_v21 = vmul.f32 1.4142135, %v881_v19  ;;  %v882_v22 = vsel %vm850_vm13, %v817_v39, %v866_v16  ;;  %1213 = vmatpush1.bf16.msra.mxu1 %v1212_v10  ;;  %v823_v44 = vadd.f32 %v822_v20, %v1532_v35 }
 0x65f   :  { %v898_v9 = vmul.f32 1.4142135, %v882_v22  ;;  %v867_v48 = vmul.f32 0.2, %v821_v42  ;;  %vm851_vm14 = vcmp.ge.f32.partialorder %v821_v42, 0.0  ;;  %v919_v22 = vld [vmem:[%s1575_s4] sm:$0xff] }
 0x660   :  { %v959_v28 = vmul.f32 %v935_v26, %v897_v21  ;;  %v826_v29 = vpop.f32.mrb[16].mxu0  ;;  %v868_v49 = vmul.f32 0.2, %v823_v44  ;;  %vm852_vm15 = vcmp.ge.f32.partialorder %v823_v44, 0.0 }
 0x661   :  { %v828_v30 = vpop.f32.mrb[17].mxu0  ;;  %v960_v32 = vmul.f32 %v935_v26, %v898_v9  ;;  %v827_v45 = vadd.f32 %v826_v29, %v1534_v36  ;;  %v883_v53 = vsel %vm851_vm14, %v821_v42, %v867_v48 }
 0x662   :  { %v1216_v33 = vpack.c.bf16 %v959_v28, %v957_v27  ;;  %v829_v47 = vadd.f32 %v828_v30, %v1534_v36  ;;  %v884_v55 = vsel %vm852_vm15, %v823_v44, %v868_v49  ;;  %v899_v58 = vmul.f32 1.4142135, %v883_v53 }
 0x663   :  { %v1214_v34 = vpack.c.bf16 %v960_v32, %v958_v31  ;;  %v869_v50 = vmul.f32 0.2, %v827_v45  ;;  %vm853_vm0 = vcmp.ge.f32.partialorder %v827_v45, 0.0  ;;  %v900_v61 = vmul.f32 1.4142135, %v884_v55 }
 0x664   :  { %v832_v37 = vpop.f32.mrb[18].mxu0  ;;  %v870_v51 = vmul.f32 0.2, %v829_v47  ;;  %vm854_vm1 = vcmp.ge.f32.partialorder %v829_v47, 0.0 }
 0x665   :  { %v834_v38 = vpop.f32.mrb[19].mxu0  ;;  %1215 = vmatprep.subr.bf16.mxu1 %v1214_v34  ;;  %v833_v52 = vadd.f32 %v832_v37, %v1538_v43  ;;  %v885_v56 = vsel %vm853_vm0, %v827_v45, %v869_v50 }
 0x666   :  { %1217 = vmatpush1.bf16.msra.mxu1 %v1216_v33  ;;  %v835_v54 = vadd.f32 %v834_v38, %v1538_v43  ;;  %v886_v36 = vsel %vm854_vm1, %v829_v47, %v870_v51  ;;  %v901_v24 = vmul.f32 1.4142135, %v885_v56 }
 0x667   :  { %v871_v59 = vmul.f32 0.2, %v833_v52  ;;  %vm855_vm2 = vcmp.ge.f32.partialorder %v833_v52, 0.0  ;;  %v902_v63 = vmul.f32 1.4142135, %v886_v36 }
 0x668   :  { %v838_v40 = vpop.f32.mrb[20].mxu0  ;;  %vm856_vm3 = vcmp.ge.f32.partialorder %v835_v54, 0.0  ;;  %v872_v62 = vmul.f32 0.2, %v835_v54 }
 0x669   :  { %v840_v41 = vpop.f32.mrb[21].mxu0  ;;  %v839_v35 = vadd.f32 %v838_v40, %v1540_v46  ;;  %v887_v7 = vsel %vm855_vm2, %v833_v52, %v871_v59 }
 0x66a   :  { %v841_v57 = vadd.f32 %v840_v41, %v1540_v46  ;;  %v888_v8 = vsel %vm856_vm3, %v835_v54, %v872_v62  ;;  %v903_v39 = vmul.f32 1.4142135, %v887_v7 }
 0x66b   :  { %v873_v0 = vmul.f32 0.2, %v839_v35  ;;  %vm857_vm4 = vcmp.ge.f32.partialorder %v839_v35, 0.0  ;;  %v904_v10 = vmul.f32 1.4142135, %v888_v8 }
 0x66c   :  { %v874_v1 = vmul.f32 0.2, %v841_v57  ;;  %vm858_vm5 = vcmp.ge.f32.partialorder %v841_v57, 0.0 }
 0x66d   :  { %v889_v11 = vsel %vm857_vm4, %v839_v35, %v873_v0 }
 0x66e   :  { %v890_v12 = vsel %vm858_vm5, %v841_v57, %v874_v1  ;;  %v905_v13 = vmul.f32 1.4142135, %v889_v11 }
 0x66f   :  { %v906_v14 = vmul.f32 1.4142135, %v890_v12 }
 0x689   :  { %v939_v60 = vpop.permute.xlu1 %938 }
 0x68a   :  { %v961_v43 = vmul.f32 %v939_v60, %v899_v58  ;;  %v962_v3 = vmul.f32 %v939_v60, %v900_v61 }
 0x68d   :  { %v943_v2 = vpop.permute.xlu0 %942 }
 0x68e   :  { %v963_v4 = vmul.f32 %v943_v2, %v901_v24  ;;  %v964_v5 = vmul.f32 %v943_v2, %v902_v63 }
 0x690   :  { %v1218_v46 = vpack.c.bf16 %v964_v5, %v962_v3  ;;  %v1220_v6 = vpack.c.bf16 %v963_v4, %v961_v43 }
 0x691   :  { %v947_v23 = vpop.permute.xlu1 %946 }
 0x692   :  { %1219 = vmatprep.subr.bf16.mxu1 %v1218_v46  ;;  %v965_v16 = vmul.f32 %v947_v23, %v903_v39  ;;  %v966_v17 = vmul.f32 %v947_v23, %v904_v10 }
 0x693   :  { %1221 = vmatpush1.bf16.msra.mxu1 %v1220_v6 }
 0x695   :  { %v951_v15 = vpop.permute.xlu0 %950  ;;  %v972_v25 = vpop.permute.xlu1 %971 }
 0x696   :  { %v967_v18 = vmul.f32 %v951_v15, %v905_v13  ;;  %v968_v19 = vmul.f32 %v951_v15, %v906_v14 }
 0x698   :  { %v1222_v20 = vpack.c.bf16 %v968_v19, %v966_v17  ;;  %v1224_v21 = vpack.c.bf16 %v967_v18, %v965_v16 }
 0x69a   :  { %1223 = vmatprep.subr.bf16.mxu1 %v1222_v20 }
 0x69b   :  { %1225 = vmatpush1.bf16.msra.mxu1 %v1224_v21 }
 0x69e   :  { %1087 = vmatmul.mubr.msk.f32.vlgmr.msra.gmra.mrb[10].mxu1 %vm974_vm6, %v919_v22 }
 0x771   :  { %v1044_v26 = vpop.f32.mrb[10].mxu1 }
 0x772   :  { %v1045_v9 = vadd.f32 %v1044_v26, %v972_v25  ;;  %v1046_v27 = vpop.f32.mrb[11].mxu1 }
 0x773   :  { %v1047_v28 = vadd.f32 %v1046_v27, %v972_v25 }
 0x774   :  { %1049 = vst [vmem:[#allocation2] sm:$0xff] %v1045_v9 }
 0x775   :  { %1050 = vst [vmem:[#allocation2 + $0x8] sm:$0xff] %v1047_v28 }
 0x776   :  { %1258 = shalt.err (!%p1255_p4)
}
 0x777   :  { %s1259_s11 = scalar_lea.hbm %s1576_s5, 256 }
 0x778   :  { %p1260_p5 = scmp.ne.s32.totalorder %s1576_s5, %s1259_s11  ;;  %p1263_p6 = scmp.lt.u32.totalorder %s1259_s11, %s1576_s5 }
 0x77a   :  { %p1265_p7 = pnand %p1263_p6, %p1260_p5 }
 0x77c   :  { %1268 = shalt.err (!%p1265_p7)
}
 0x77d   :  { %1060 = dma.vmem_to_hbm [thread:$0]  %s1058_s8, 256, %s1576_s5, [#allocation3]  }
 0x77e   :  { %1269 = dma.done.wait [#allocation3], 256  }
 0x77f   :  { %1270 = vsyncadd [#allocation3], 4294967040 }
 0x780   :  { %1064 = vsyncpa [#allocation3], 1 }

</bundles_post_ra>
